<compile_context>
chip_gen: v5e
topology: v5e:2x2
jax: 0.10.0
libtpu: 0.0.40
codegen_flags: <defaults>
</compile_context>

<pallas_src>
import jax
import jax.numpy as jnp
from jax.experimental import pallas as pl
from jax.experimental.pallas import tpu as pltpu


def _round_up(v, m):
    return ((v + m - 1) // m) * m


def _vmem_capacity_bytes():
    """Physical VMEM per TensorCore; falls back to the smallest (v7x) value."""
    try:
        info = pltpu.get_tpu_info()
        for name in ("vmem_capacity_bytes", "vmem_size_bytes", "vmem_bytes"):
            v = getattr(info, name, None)
            if v:
                return int(v)
    except Exception:
        pass
    return 64 * 1024 * 1024


# --------------------------------------------------------------------------
# One-time parameter preparation (amortized across forward calls).
# --------------------------------------------------------------------------
def prepare_params(params, compute_dtype=jnp.bfloat16):
    """Transpose nn.Linear (out,in) weights to (in,out), pad features to a
    multiple of 128 (lane-dense), cast weights to the MXU compute dtype.

    params: dict with PyTorch-convention tensors:
        inp_fc_w (D, D), inp_fc_b (D,), out_fc_w (D, D), out_fc_b (D,)
    """
    cd = jnp.dtype(compute_dtype)
    D = int(params["inp_fc_w"].shape[0])
    Dp = _round_up(max(D, 128), 128)

    w1 = jnp.asarray(params["inp_fc_w"]).T.astype(cd)       # (D, D) -> (in, out)
    w2 = jnp.asarray(params["out_fc_w"]).T.astype(cd)
    b1 = jnp.asarray(params["inp_fc_b"]).astype(jnp.float32)
    b2 = jnp.asarray(params["out_fc_b"]).astype(jnp.float32)
    if Dp != D:
        pad = Dp - D
        w1 = jnp.pad(w1, ((0, pad), (0, pad)))
        w2 = jnp.pad(w2, ((0, pad), (0, pad)))
        b1 = jnp.pad(b1, (0, pad))
        b2 = jnp.pad(b2, (0, pad))
    return {
        "w1": w1, "w2": w2,
        "b1": b1.reshape(1, Dp), "b2": b2.reshape(1, Dp),
        "dim": D, "dim_padded": Dp, "compute_dtype": cd,
    }


# --------------------------------------------------------------------------
# Kernels
# --------------------------------------------------------------------------
def _mlp2_resident_kernel(x_ref, w1_ref, b1_ref, w2_ref, b2_ref, o_ref):
    """Both (Dp, Dp) weights resident in VMEM; one row tile per grid step."""
    w1 = w1_ref[...]
    w2 = w2_ref[...]
    h = jnp.dot(x_ref[...].astype(w1.dtype), w1,
                preferred_element_type=jnp.float32)
    h = jnp.maximum(h + b1_ref[...], 0.0)
    y = jnp.dot(h.astype(w2.dtype), w2, preferred_element_type=jnp.float32)
    o_ref[...] = (y + b2_ref[...]).astype(o_ref.dtype)


def _mlp2_hidden_tiled_kernel(x_ref, w1_ref, b1_ref, w2_ref, b2_ref, o_ref,
                              acc_ref):
    """Hidden-dim tiled variant: grid=(rows, Dp//tj).

    W1 block (Dp, tj), W2 block (tj, Dp); partial products accumulate into a
    resident (tm, Dp) f32 scratch; bias + store only at the last j step.
    """
    j = pl.program_id(1)

    @pl.when(j == 0)
    def _():
        acc_ref[...] = jnp.zeros_like(acc_ref)

    w1 = w1_ref[...]
    w2 = w2_ref[...]
    h = jnp.dot(x_ref[...].astype(w1.dtype), w1,
                preferred_element_type=jnp.float32)
    h = jnp.maximum(h + b1_ref[...], 0.0)
    acc_ref[...] += jnp.dot(h.astype(w2.dtype), w2,
                            preferred_element_type=jnp.float32)

    @pl.when(j == pl.num_programs(1) - 1)
    def _():
        o_ref[...] = (acc_ref[...] + b2_ref[...]).astype(o_ref.dtype)


# --------------------------------------------------------------------------
# Planning (row tile, variant selection, hidden tile)
# --------------------------------------------------------------------------
def _plan(N, Dp, cd_size, act_size, out_size, budget):
    """Return (variant, tm, tj, est_bytes)."""
    # Row tile: big enough to feed the 256-wide MXU, small enough that the
    # row grid has >= 4 steps (2 per TensorCore on megacore parts) when N
    # allows it; clamp for small N.
    if N >= 4 * 128:
        tm = min(256, max(128, _round_up(pl.cdiv(N, 4), 8)))
    else:
        tm = max(8, min(256, _round_up(N, 8)))

    def est_resident(t):
        weights = 2 * Dp * Dp * cd_size + 2 * Dp * 4            # single-buffered
        acts = 2 * t * Dp * act_size + 2 * t * Dp * out_size    # x + out, 2-deep
        temps = 2 * t * Dp * 4                                  # h, y f32 temps
        return weights + acts + temps

    def est_tiled(t, tj):
        w = 2 * Dp * tj * cd_size + 2 * tj * Dp * cd_size       # W1/W2 blocks, 2-deep
        b = 2 * 2 * tj * 4 + Dp * 4
        acts = 2 * t * Dp * act_size + 2 * t * Dp * out_size
        acc = t * Dp * 4
        temps = t * tj * 4 + t * Dp * 4
        return w + b + acts + acc + temps

    if est_resident(tm) <= budget:
        return "resident", tm, None, est_resident(tm)

    tj_opts = [t for t in (1024, 512, 256, 128) if Dp % t == 0 and t < Dp]
    if not tj_opts:
        return "resident", tm, None, est_resident(tm)            # best effort
    tm_opts = [tm] if tm <= 128 else [tm, 128]
    for tmc in tm_opts:
        for tj in tj_opts:
            if est_tiled(tmc, tj) <= budget:
                return "tiled", tmc, tj, est_tiled(tmc, tj)
    tmc, tj = tm_opts[-1], tj_opts[-1]
    return "tiled", tmc, tj, est_tiled(tmc, tj)                  # best effort


# --------------------------------------------------------------------------
# pallas_call wrapper
# --------------------------------------------------------------------------
def _forward_2d(xin, prep, out_dtype, variant, tm, tj, vmem_limit,
                single_buffer_weights):
    N = xin.shape[0]
    Dp = prep["dim_padded"]
    w1, b1, w2, b2 = prep["w1"], prep["b1"], prep["w2"], prep["b2"]
    grid_rows = pl.cdiv(N, tm)

    # Constant-index resident blocks: single-buffer them to halve their VMEM
    # footprint (no re-DMA happens anyway since the block index never changes).
    sb = {}
    if single_buffer_weights and hasattr(pl, "Buffered"):
        sb = {"pipeline_mode": pl.Buffered(1)}

    if variant == "resident":
        grid = (grid_rows,)
        in_specs = [
            pl.BlockSpec((tm, Dp), lambda i: (i, 0)),            # x row tile
            pl.BlockSpec((Dp, Dp), lambda i: (0, 0), **sb),      # W1 (resident)
            pl.BlockSpec((1, Dp), lambda i: (0, 0), **sb),       # b1
            pl.BlockSpec((Dp, Dp), lambda i: (0, 0), **sb),      # W2 (resident)
            pl.BlockSpec((1, Dp), lambda i: (0, 0), **sb),       # b2
        ]
        out_spec = pl.BlockSpec((tm, Dp), lambda i: (i, 0))
        scratch = []
        kernel = _mlp2_resident_kernel
        dims = ("parallel",)
    else:
        grid = (grid_rows, Dp // tj)                             # j (reduction) last
        in_specs = [
            pl.BlockSpec((tm, Dp), lambda i, j: (i, 0)),         # x row tile
            pl.BlockSpec((Dp, tj), lambda i, j: (0, j)),         # W1 column block
            pl.BlockSpec((1, tj), lambda i, j: (0, j)),          # b1 block
            pl.BlockSpec((tj, Dp), lambda i, j: (j, 0)),         # W2 row block
            pl.BlockSpec((1, Dp), lambda i, j: (0, 0), **sb),    # b2 (resident)
        ]
        out_spec = pl.BlockSpec((tm, Dp), lambda i, j: (i, 0))
        scratch = [pltpu.VMEM((tm, Dp), jnp.float32)]
        kernel = _mlp2_hidden_tiled_kernel
        dims = ("parallel", "arbitrary")

    return pl.pallas_call(
        kernel,
        out_shape=jax.ShapeDtypeStruct((N, Dp), out_dtype),
        grid_spec=pltpu.PrefetchScalarGridSpec(
            num_scalar_prefetch=0,
            grid=grid,
            in_specs=in_specs,
            out_specs=out_spec,
            scratch_shapes=scratch,
        ),
        compiler_params=pltpu.CompilerParams(
            dimension_semantics=dims,
            vmem_limit_bytes=int(vmem_limit)),
    )(xin, w1, b1, w2, b2)


def bottleneck_perceptron_2_layer(x, prep, *, vmem_budget_bytes=None,
                                  stage_activations=True):
    """Forward pass of the 2-layer bottleneck MLP applied to the last dim of x.

    `prep` must come from prepare_params().  Works for any leading dims.
    """
    D, Dp, cd = prep["dim"], prep["dim_padded"], prep["compute_dtype"]
    assert x.shape[-1] == D, f"expected last dim {D}, got {x.shape[-1]}"

    lead = x.shape[:-1]
    x2 = x.reshape(-1, D)
    N = x2.shape[0]
    out_dtype = x.dtype

    # Stage activations in the (narrower) compute dtype so activation DMAs and
    # their VMEM double-buffers are half-size; pad features only if needed.
    xin = x2
    if stage_activations and jnp.dtype(cd).itemsize < jnp.dtype(x2.dtype).itemsize:
        xin = xin.astype(cd)
    if Dp != D:
        xin = jnp.pad(xin, ((0, 0), (0, Dp - D)))

    cap = _vmem_capacity_bytes()
    budget = int(vmem_budget_bytes) if vmem_budget_bytes else int(cap * 0.70)
    variant, tm, tj, est = _plan(
        N, Dp, jnp.dtype(cd).itemsize, jnp.dtype(xin.dtype).itemsize,
        jnp.dtype(out_dtype).itemsize, budget)

    # Explicit scoped-VMEM limit: working set + headroom, capped below the
    # physical per-core capacity (64 MiB on v7x).
    vmem_limit = int(min(max(cap - (2 << 20), 16 << 20),
                         max(est + (8 << 20), 32 << 20)))

    try:
        out = _forward_2d(xin, prep, out_dtype, variant, tm, tj, vmem_limit,
                          single_buffer_weights=True)
    except Exception:
        # Fallback for jax versions without BlockSpec(pipeline_mode=...):
        # identical kernel, default double-buffered weight blocks.
        out = _forward_2d(xin, prep, out_dtype, variant, tm, tj, vmem_limit,
                          single_buffer_weights=False)

    if Dp != D:
        out = out[:, :D]
    return out.reshape(*lead, D)


# --------------------------------------------------------------------------
# Reference + test harness
# --------------------------------------------------------------------------
def _init_params(key, in_dim):
    """Deterministic init matching nn.Linear shapes (PyTorch convention)."""
    ks = jax.random.split(key, 4)

    def uniform(k, shape, fan_in):
        bound = 1.0 / jnp.sqrt(fan_in)
        return jax.random.uniform(k, shape, jnp.float32, -bound, bound)

    return {
        "inp_fc_w": uniform(ks[0], (in_dim, in_dim), in_dim),
        "inp_fc_b": uniform(ks[1], (in_dim,), in_dim),
        "out_fc_w": uniform(ks[2], (in_dim, in_dim), in_dim),
        "out_fc_b": uniform(ks[3], (in_dim,), in_dim),
    }


def _reference(x, p):
    """Pure-JAX reference matching the PyTorch forward exactly."""
    h = jax.nn.relu(x @ p["inp_fc_w"].T + p["inp_fc_b"])
    return h @ p["out_fc_w"].T + p["out_fc_b"]


if __name__ == "__main__":
    key = jax.random.PRNGKey(0)
    k_x, k_p, k_x2, k_p2, k_x3, k_p3 = jax.random.split(key, 6)

    # 1) Small lane-aligned shapes, f32 compute path -> tight tolerance.
    B, T, D = 2, 8, 128
    x = jax.random.normal(k_x, (B, T, D), jnp.float32)
    params = _init_params(k_p, D)
    ref = _reference(x, params)

    prep_f32 = prepare_params(params, compute_dtype=jnp.float32)
    out = jax.block_until_ready(bottleneck_perceptron_2_layer(x, prep_f32))
    assert out.shape == (B, T, D)
    assert jnp.allclose(out, ref, atol=1e-5, rtol=1e-5), "f32 mismatch"

    # 2) Default bf16 MXU path (f32 accumulation): looser tolerance.
    prep_bf16 = prepare_params(params)          # compute_dtype defaults to bf16
    out_bf = jax.block_until_ready(bottleneck_perceptron_2_layer(x, prep_bf16))
    assert out_bf.shape == (B, T, D)
    assert jnp.allclose(out_bf, ref, atol=5e-2, rtol=5e-2), "bf16 mismatch"

    # 3) Ragged row count + non-lane-aligned feature dim (exercises the cdiv
    #    row grid with a masked last block and the feature-padding path).
    N2, D2 = 37, 96
    x2 = jax.random.normal(k_x2, (N2, D2), jnp.float32)
    params2 = _init_params(k_p2, D2)
    prep2 = prepare_params(params2, compute_dtype=jnp.float32)
    out2 = jax.block_until_ready(bottleneck_perceptron_2_layer(x2, prep2))
    assert out2.shape == (N2, D2)
    assert jnp.allclose(out2, _reference(x2, params2),
                        atol=1e-5, rtol=1e-5), "ragged/padded-path mismatch"

    # 4) Force the hidden-dim-tiled variant with a tiny planning budget
    #    (this is what the planner does when D x D weights exceed VMEM).
    N3, D3 = 16, 256
    x3 = jax.random.normal(k_x3, (N3, D3), jnp.float32)
    params3 = _init_params(k_p3, D3)
    prep3 = prepare_params(params3, compute_dtype=jnp.float32)
    out3 = jax.block_until_ready(
        bottleneck_perceptron_2_layer(x3, prep3, vmem_budget_bytes=200_000))
    assert out3.shape == (N3, D3)
    assert jnp.allclose(out3, _reference(x3, params3),
                        atol=1e-4, rtol=1e-4), "hidden-tiled-path mismatch"

    print("KERNEL_OK")
</pallas_src>

<mosaic_0001>
module attributes {stable_mosaic.version = 11 : i64} {
  func.func @_mlp2_resident_kernel(%arg0: i32, %arg1: memref<16x128xf32, #tpu.memory_space<vmem>>, %arg2: memref<128x128xf32, #tpu.memory_space<vmem>>, %arg3: memref<1x128xf32, #tpu.memory_space<vmem>>, %arg4: memref<128x128xf32, #tpu.memory_space<vmem>>, %arg5: memref<1x128xf32, #tpu.memory_space<vmem>>, %arg6: memref<16x128xf32, #tpu.memory_space<vmem>>) attributes {dimension_semantics = [#tpu.dimension_semantics<parallel>], iteration_bounds = array<i64: 1>, scalar_prefetch = 0 : i64, scratch_operands = 0 : i64, tpu.core_type = #tpu.core_type<tc>, window_params = [{transform_indices = @transform_0, window_bounds = array<i64: 16, 128>}, {pipeline_mode = #tpu.pipeline_mode<synchronous>, transform_indices = @transform_1, window_bounds = array<i64: 128, 128>}, {pipeline_mode = #tpu.pipeline_mode<synchronous>, transform_indices = @transform_2, window_bounds = array<i64: 1, 128>}, {pipeline_mode = #tpu.pipeline_mode<synchronous>, transform_indices = @transform_3, window_bounds = array<i64: 128, 128>}, {pipeline_mode = #tpu.pipeline_mode<synchronous>, transform_indices = @transform_4, window_bounds = array<i64: 1, 128>}, {transform_indices = @transform_5, window_bounds = array<i64: 16, 128>}]} {
    %c0 = arith.constant 0 : index
    %c0_0 = arith.constant 0 : index
    %0 = vector.load %arg2[%c0, %c0_0] : memref<128x128xf32, #tpu.memory_space<vmem>>, vector<128x128xf32>
    %c0_1 = arith.constant 0 : index
    %c0_2 = arith.constant 0 : index
    %1 = vector.load %arg4[%c0_1, %c0_2] : memref<128x128xf32, #tpu.memory_space<vmem>>, vector<128x128xf32>
    %c0_3 = arith.constant 0 : index
    %c0_4 = arith.constant 0 : index
    %2 = vector.load %arg1[%c0_3, %c0_4] : memref<16x128xf32, #tpu.memory_space<vmem>>, vector<16x128xf32>
    %cst = arith.constant dense<0.000000e+00> : vector<16x128xf32>
    %3 = tpu.matmul %2, %0, %cst {dimension_numbers = #tpu.dot_dimension_numbers<[1], [0], [0], [1], [0, 0, 1, 1], [], []>} : vector<16x128xf32>, vector<128x128xf32>, vector<16x128xf32> -> vector<16x128xf32>
    %c0_5 = arith.constant 0 : index
    %c0_6 = arith.constant 0 : index
    %4 = vector.load %arg3[%c0_5, %c0_6] : memref<1x128xf32, #tpu.memory_space<vmem>>, vector<1x128xf32>
    %5 = vector.broadcast %4 : vector<1x128xf32> to vector<16x128xf32>
    %6 = arith.addf %3, %5 : vector<16x128xf32>
    %cst_7 = arith.constant 0.000000e+00 : f32
    %7 = vector.broadcast %cst_7 : f32 to vector<16x128xf32>
    %8 = arith.maximumf %6, %7 : vector<16x128xf32>
    %cst_8 = arith.constant dense<0.000000e+00> : vector<16x128xf32>
    %9 = tpu.matmul %8, %1, %cst_8 {dimension_numbers = #tpu.dot_dimension_numbers<[1], [0], [0], [1], [0, 0, 1, 1], [], []>} : vector<16x128xf32>, vector<128x128xf32>, vector<16x128xf32> -> vector<16x128xf32>
    %c0_9 = arith.constant 0 : index
    %c0_10 = arith.constant 0 : index
    %10 = vector.load %arg5[%c0_9, %c0_10] : memref<1x128xf32, #tpu.memory_space<vmem>>, vector<1x128xf32>
    %11 = vector.broadcast %10 : vector<1x128xf32> to vector<16x128xf32>
    %12 = arith.addf %9, %11 : vector<16x128xf32>
    %c0_11 = arith.constant 0 : index
    %c0_12 = arith.constant 0 : index
    %13 = vector.load %arg6[%c0_11, %c0_12] : memref<16x128xf32, #tpu.memory_space<vmem>>, vector<16x128xf32>
    tpu.vector_store %arg6[%c0_11, %c0_12], %12 {strides = array<i32>} : memref<16x128xf32, #tpu.memory_space<vmem>>, vector<16x128xf32>,
    return
  }
  func.func @transform_0(%arg0: i32) -> (i32, i32) {
    %c0_i32 = arith.constant 0 : i32
    %c0_i32_0 = arith.constant 0 : i32
    return %arg0, %c0_i32 : i32, i32
  }
  func.func @transform_1(%arg0: i32) -> (i32, i32) {
    %c0_i32 = arith.constant 0 : i32
    %c0_i32_0 = arith.constant 0 : i32
    %c0_i32_1 = arith.constant 0 : i32
    return %c0_i32, %c0_i32_0 : i32, i32
  }
  func.func @transform_2(%arg0: i32) -> (i32, i32) {
    %c0_i32 = arith.constant 0 : i32
    %c0_i32_0 = arith.constant 0 : i32
    %c0_i32_1 = arith.constant 0 : i32
    return %c0_i32, %c0_i32_0 : i32, i32
  }
  func.func @transform_3(%arg0: i32) -> (i32, i32) {
    %c0_i32 = arith.constant 0 : i32
    %c0_i32_0 = arith.constant 0 : i32
    %c0_i32_1 = arith.constant 0 : i32
    return %c0_i32, %c0_i32_0 : i32, i32
  }
  func.func @transform_4(%arg0: i32) -> (i32, i32) {
    %c0_i32 = arith.constant 0 : i32
    %c0_i32_0 = arith.constant 0 : i32
    %c0_i32_1 = arith.constant 0 : i32
    return %c0_i32, %c0_i32_0 : i32, i32
  }
  func.func @transform_5(%arg0: i32) -> (i32, i32) {
    %c0_i32 = arith.constant 0 : i32
    %c0_i32_0 = arith.constant 0 : i32
    return %arg0, %c0_i32 : i32, i32
  }
}

module attributes {stable_mosaic.version = 11 : i64} {
  func.func @_mlp2_resident_kernel(%arg0: i32, %arg1: memref<16x128xf32, #tpu.memory_space<vmem>>, %arg2: memref<128x128xf32, #tpu.memory_space<vmem>>, %arg3: memref<1x128xf32, #tpu.memory_space<vmem>>, %arg4: memref<128x128xf32, #tpu.memory_space<vmem>>, %arg5: memref<1x128xf32, #tpu.memory_space<vmem>>, %arg6: memref<16x128xf32, #tpu.memory_space<vmem>>) attributes {dimension_semantics = [#tpu.dimension_semantics<parallel>], iteration_bounds = array<i64: 1>, scalar_prefetch = 0 : i64, scratch_operands = 0 : i64, tpu.core_type = #tpu.core_type<tc>, window_params = [{transform_indices = @transform_0, window_bounds = array<i64: 16, 128>}, {pipeline_mode = #tpu.pipeline_mode<synchronous>, transform_indices = @transform_1, window_bounds = array<i64: 128, 128>}, {pipeline_mode = #tpu.pipeline_mode<synchronous>, transform_indices = @transform_2, window_bounds = array<i64: 1, 128>}, {pipeline_mode = #tpu.pipeline_mode<synchronous>, transform_indices = @transform_3, window_bounds = array<i64: 128, 128>}, {pipeline_mode = #tpu.pipeline_mode<synchronous>, transform_indices = @transform_4, window_bounds = array<i64: 1, 128>}, {transform_indices = @transform_5, window_bounds = array<i64: 16, 128>}]} {
    %c0 = arith.constant 0 : index
    %c0_0 = arith.constant 0 : index
    %0 = vector.load %arg2[%c0, %c0_0] : memref<128x128xf32, #tpu.memory_space<vmem>>, vector<128x128xf32>
    %c0_1 = arith.constant 0 : index
    %c0_2 = arith.constant 0 : index
    %1 = vector.load %arg4[%c0_1, %c0_2] : memref<128x128xf32, #tpu.memory_space<vmem>>, vector<128x128xf32>
    %c0_3 = arith.constant 0 : index
    %c0_4 = arith.constant 0 : index
    %2 = vector.load %arg1[%c0_3, %c0_4] : memref<16x128xf32, #tpu.memory_space<vmem>>, vector<16x128xf32>
    %cst = arith.constant dense<0.000000e+00> : vector<16x128xf32>
    %3 = tpu.matmul %2, %0, %cst {dimension_numbers = #tpu.dot_dimension_numbers<[1], [0], [0], [1], [0, 0, 1, 1], [], []>} : vector<16x128xf32>, vector<128x128xf32>, vector<16x128xf32> -> vector<16x128xf32>
    %c0_5 = arith.constant 0 : index
    %c0_6 = arith.constant 0 : index
    %4 = vector.load %arg3[%c0_5, %c0_6] : memref<1x128xf32, #tpu.memory_space<vmem>>, vector<1x128xf32>
    %5 = vector.broadcast %4 : vector<1x128xf32> to vector<16x128xf32>
    %6 = arith.addf %3, %5 : vector<16x128xf32>
    %cst_7 = arith.constant 0.000000e+00 : f32
    %7 = vector.broadcast %cst_7 : f32 to vector<16x128xf32>
    %8 = arith.maximumf %6, %7 : vector<16x128xf32>
    %cst_8 = arith.constant dense<0.000000e+00> : vector<16x128xf32>
    %9 = tpu.matmul %8, %1, %cst_8 {dimension_numbers = #tpu.dot_dimension_numbers<[1], [0], [0], [1], [0, 0, 1, 1], [], []>} : vector<16x128xf32>, vector<128x128xf32>, vector<16x128xf32> -> vector<16x128xf32>
    %c0_9 = arith.constant 0 : index
    %c0_10 = arith.constant 0 : index
    %10 = vector.load %arg5[%c0_9, %c0_10] : memref<1x128xf32, #tpu.memory_space<vmem>>, vector<1x128xf32>
    %11 = vector.broadcast %10 : vector<1x128xf32> to vector<16x128xf32>
    %12 = arith.addf %9, %11 : vector<16x128xf32>
    %c0_11 = arith.constant 0 : index
    %c0_12 = arith.constant 0 : index
    %13 = vector.load %arg6[%c0_11, %c0_12] : memref<16x128xf32, #tpu.memory_space<vmem>>, vector<16x128xf32>
    tpu.vector_store %arg6[%c0_11, %c0_12], %12 {strides = array<i32>} : memref<16x128xf32, #tpu.memory_space<vmem>>, vector<16x128xf32>,
    return
  }
  func.func @transform_0(%arg0: i32) -> (i32, i32) {
    %c0_i32 = arith.constant 0 : i32
    %c0_i32_0 = arith.constant 0 : i32
    return %arg0, %c0_i32 : i32, i32
  }
  func.func @transform_1(%arg0: i32) -> (i32, i32) {
    %c0_i32 = arith.constant 0 : i32
    %c0_i32_0 = arith.constant 0 : i32
    %c0_i32_1 = arith.constant 0 : i32
    return %c0_i32, %c0_i32_0 : i32, i32
  }
  func.func @transform_2(%arg0: i32) -> (i32, i32) {
    %c0_i32 = arith.constant 0 : i32
    %c0_i32_0 = arith.constant 0 : i32
    %c0_i32_1 = arith.constant 0 : i32
    return %c0_i32, %c0_i32_0 : i32, i32
  }
  func.func @transform_3(%arg0: i32) -> (i32, i32) {
    %c0_i32 = arith.constant 0 : i32
    %c0_i32_0 = arith.constant 0 : i32
    %c0_i32_1 = arith.constant 0 : i32
    return %c0_i32, %c0_i32_0 : i32, i32
  }
  func.func @transform_4(%arg0: i32) -> (i32, i32) {
    %c0_i32 = arith.constant 0 : i32
    %c0_i32_0 = arith.constant 0 : i32
    %c0_i32_1 = arith.constant 0 : i32
    return %c0_i32, %c0_i32_0 : i32, i32
  }
  func.func @transform_5(%arg0: i32) -> (i32, i32) {
    %c0_i32 = arith.constant 0 : i32
    %c0_i32_0 = arith.constant 0 : i32
    return %arg0, %c0_i32 : i32, i32
  }
}

</mosaic_0001>

<bundles_post_ra>
// kernel: tpu_custom_call.1
= control target key start
LH: loop header
LB: loop body
LE: loop exit
PB: predicated region body
PF: predicated region fallthrough
CT: control target
= control target key end

     0   :  { %10 = vsyncpa [#allocation3], 0  ;;  %s388_s0 = inlined_call_operand.hbm [shape: f32[16,128], index: 0, kind: input, shape index: {}]   ;;  %s389_s1 = inlined_call_operand.hbm [shape: f32[128,128], index: 1, kind: input, shape index: {}]   ;;  %s390_s2 = inlined_call_operand.vmem [shape: f32[1,128], index: 2, kind: input, shape index: {}]   ;;  %s391_s3 = inlined_call_operand.hbm [shape: f32[128,128], index: 3, kind: input, shape index: {}]   ;;  %s392_s4 = inlined_call_operand.vmem [shape: f32[1,128], index: 4, kind: input, shape index: {}]   ;;  %s393_s5 = inlined_call_operand.hbm [shape: f32[16,128], index: 5, kind: output, shape index: {}]  }
   0x1   :  { %11 = vsyncpa [#allocation6], 0 }
   0x2   :  { %12 = vsyncpa [#allocation4], 0  ;;  %s30_s20 = sshll.u32 %s389_s1, 4  ;;  %s322_s21 = smov [#allocation5]   ;;  %s31_s20 = int_to_ptr.hbm [resolvable:$true] %s30_s20 }
   0x3   :  { %s32_s22 = sshll.u32 %s322_s21, 4  ;;  %s17_s25 = sshll.u32 %s388_s0, 4  ;;  %s33_s22 = int_to_ptr.vmem [resolvable:$true] %s32_s22  ;;  %s18_s25 = int_to_ptr.hbm [resolvable:$true] %s17_s25 }
   0x4   :  { %s323_s26 = smov 128   ;;  %s324_s27 = smov 8  }
   0x5   :  { %38 = dma.hbm_to_vmem [thread:$0]  %s31_s20, 2048, %s33_s22, [#allocation6], %s323_s26, %s323_s26, %s324_s27  }
   0x6   :  { %s325_s28 = smov [#allocation2]   ;;  %s45_s1 = sshll.u32 %s391_s3, 4  ;;  %s46_s1 = int_to_ptr.hbm [resolvable:$true] %s45_s1 }
   0x7   :  { %s19_s29 = sshll.u32 %s325_s28, 4  ;;  %s326_s0 = smov [#allocation7]   ;;  %s20_s29 = int_to_ptr.vmem [resolvable:$true] %s19_s29 }
   0x8   :  { %25 = dma.hbm_to_vmem [thread:$0]  %s18_s25, 256, %s20_s29, [#allocation3], %s323_s26, %s323_s26, %s324_s27  }
   0x9   :  { %s47_s7 = sshll.u32 %s326_s0, 4  ;;  %s48_s7 = int_to_ptr.vmem [resolvable:$true] %s47_s7 }
   0xa   :  { %53 = dma.hbm_to_vmem [thread:$0]  %s46_s1, 2048, %s48_s7, [#allocation6], %s323_s26, %s323_s26, %s324_s27  }
   0xb   :  { %316 = dma.done.wait [#allocation3], 256  }
   0xc   :  { %317 = vsyncadd [#allocation3], 4294967040 }
   0xd   :  { %318 = dma.done.wait [#allocation6], 4096  }
   0xe   :  { %319 = vsyncadd [#allocation6], 4294963200  ;;  %v83_v0 = vld [vmem:[#allocation5 + $0x78] sm:$0xff]  ;;  %v82_v1 = vld [vmem:[#allocation5 + $0x70] sm:$0xff]  ;;  %s327_s11 = smov [#allocation8]  }
   0xf   :  { %180 = vmatpush.msra.mxu2 %v83_v0  ;;  %106 = vmatpush.msra.mxu0 %v83_v0  ;;  %v81_v2 = vld [vmem:[#allocation5 + $0x68] sm:$0xff]  ;;  %v80_v3 = vld [vmem:[#allocation5 + $0x60] sm:$0xff]  ;;  %v79_v4 = vld [vmem:[#allocation5 + $0x58] sm:$0xff]  ;;  %s164_s12 = sshll.u32 %s327_s11, 4  ;;  %s165_s12 = int_to_ptr.vmem [resolvable:$true] %s164_s12 }
  0x10   :  { %v99_v5 = vld [vmem:[#allocation7 + $0x78] sm:$0xff]  ;;  %v98_v6 = vld [vmem:[#allocation7 + $0x70] sm:$0xff]  ;;  %v97_v8 = vld [vmem:[#allocation7 + $0x68] sm:$0xff] }
  0x11   :  { %181 = vmatpush.msra.mxu2 %v82_v1  ;;  %107 = vmatpush.msra.mxu0 %v82_v1  ;;  %v78_v7 = vld [vmem:[#allocation5 + $0x50] sm:$0xff]  ;;  %v77_v9 = vld [vmem:[#allocation5 + $0x48] sm:$0xff]  ;;  %v96_v10 = vld [vmem:[#allocation7 + $0x60] sm:$0xff] }
  0x12   :  { %196 = vmatpush.msra.mxu3 %v99_v5  ;;  %135 = vmatpush.msra.mxu1 %v99_v5  ;;  %v76_v11 = vld [vmem:[#allocation5 + $0x40] sm:$0xff]  ;;  %v95_v12 = vld [vmem:[#allocation7 + $0x58] sm:$0xff]  ;;  %v94_v14 = vld [vmem:[#allocation7 + $0x50] sm:$0xff] }
  0x13   :  { %182 = vmatpush.msra.mxu2 %v81_v2  ;;  %108 = vmatpush.msra.mxu0 %v81_v2  ;;  %v75_v13 = vld [vmem:[#allocation5 + $0x38] sm:$0xff]  ;;  %v74_v15 = vld [vmem:[#allocation5 + $0x30] sm:$0xff]  ;;  %v93_v16 = vld [vmem:[#allocation7 + $0x48] sm:$0xff] }
  0x14   :  { %197 = vmatpush.msra.mxu3 %v98_v6  ;;  %136 = vmatpush.msra.mxu1 %v98_v6  ;;  %v73_v17 = vld [vmem:[#allocation5 + $0x28] sm:$0xff]  ;;  %v92_v18 = vld [vmem:[#allocation7 + $0x40] sm:$0xff]  ;;  %v91_v20 = vld [vmem:[#allocation7 + $0x38] sm:$0xff] }
  0x15   :  { %183 = vmatpush.msra.mxu2 %v80_v3  ;;  %109 = vmatpush.msra.mxu0 %v80_v3  ;;  %v72_v19 = vld [vmem:[#allocation5 + $0x20] sm:$0xff]  ;;  %v71_v21 = vld [vmem:[#allocation5 + $0x18] sm:$0xff]  ;;  %v90_v22 = vld [vmem:[#allocation7 + $0x30] sm:$0xff] }
  0x16   :  { %198 = vmatpush.msra.mxu3 %v97_v8  ;;  %137 = vmatpush.msra.mxu1 %v97_v8  ;;  %v70_v23 = vld [vmem:[#allocation5 + $0x10] sm:$0xff]  ;;  %v89_v24 = vld [vmem:[#allocation7 + $0x28] sm:$0xff]  ;;  %v88_v26 = vld [vmem:[#allocation7 + $0x20] sm:$0xff] }
  0x17   :  { %184 = vmatpush.msra.mxu2 %v79_v4  ;;  %110 = vmatpush.msra.mxu0 %v79_v4  ;;  %v69_v25 = vld [vmem:[#allocation5 + $0x8] sm:$0xff]  ;;  %v68_v27 = vld [vmem:[#allocation5] sm:$0xff]  ;;  %v101_v28 = vld [vmem:[#allocation2 + $0x8] sm:$0xff] }
  0x18   :  { %199 = vmatpush.msra.mxu3 %v96_v10  ;;  %138 = vmatpush.msra.mxu1 %v96_v10  ;;  %v100_v29 = vld [vmem:[#allocation2] sm:$0xff]  ;;  %v87_v30 = vld [vmem:[#allocation7 + $0x18] sm:$0xff]  ;;  %v85_v32 = vld [vmem:[#allocation7 + $0x8] sm:$0xff] }
  0x19   :  { %185 = vmatpush.msra.mxu2 %v78_v7  ;;  %111 = vmatpush.msra.mxu0 %v78_v7  ;;  %v86_v31 = vld [vmem:[#allocation7 + $0x10] sm:$0xff]  ;;  %v84_v33 = vld [vmem:[#allocation7] sm:$0xff] }
  0x1a   :  { %200 = vmatpush.msra.mxu3 %v95_v12  ;;  %139 = vmatpush.msra.mxu1 %v95_v12  ;;  %v218_v34 = vld [vmem:[%s390_s2] ss:$0 sm:$0xff]  ;;  %s166_s2 = sshll.u32 %s393_s5, 4  ;;  %s167_s2 = int_to_ptr.hbm [resolvable:$true] %s166_s2 }
  0x1b   :  { %186 = vmatpush.msra.mxu2 %v77_v9  ;;  %112 = vmatpush.msra.mxu0 %v77_v9  ;;  %v219_v41 = vld [vmem:[%s392_s4] ss:$0 sm:$0xff] }
  0x1c   :  { %201 = vmatpush.msra.mxu3 %v94_v14  ;;  %140 = vmatpush.msra.mxu1 %v94_v14 }
  0x1d   :  { %187 = vmatpush.msra.mxu2 %v76_v11  ;;  %113 = vmatpush.msra.mxu0 %v76_v11 }
  0x1e   :  { %202 = vmatpush.msra.mxu3 %v93_v16  ;;  %141 = vmatpush.msra.mxu1 %v93_v16 }
  0x1f   :  { %188 = vmatpush.msra.mxu2 %v75_v13  ;;  %114 = vmatpush.msra.mxu0 %v75_v13 }
  0x20   :  { %203 = vmatpush.msra.mxu3 %v92_v18  ;;  %142 = vmatpush.msra.mxu1 %v92_v18 }
  0x21   :  { %189 = vmatpush.msra.mxu2 %v74_v15  ;;  %115 = vmatpush.msra.mxu0 %v74_v15 }
  0x22   :  { %204 = vmatpush.msra.mxu3 %v91_v20  ;;  %143 = vmatpush.msra.mxu1 %v91_v20 }
  0x23   :  { %190 = vmatpush.msra.mxu2 %v73_v17  ;;  %116 = vmatpush.msra.mxu0 %v73_v17 }
  0x24   :  { %205 = vmatpush.msra.mxu3 %v90_v22  ;;  %144 = vmatpush.msra.mxu1 %v90_v22 }
  0x25   :  { %191 = vmatpush.msra.mxu2 %v72_v19  ;;  %117 = vmatpush.msra.mxu0 %v72_v19 }
  0x26   :  { %206 = vmatpush.msra.mxu3 %v89_v24  ;;  %145 = vmatpush.msra.mxu1 %v89_v24 }
  0x27   :  { %192 = vmatpush.msra.mxu2 %v71_v21  ;;  %118 = vmatpush.msra.mxu0 %v71_v21 }
  0x28   :  { %207 = vmatpush.msra.mxu3 %v88_v26  ;;  %146 = vmatpush.msra.mxu1 %v88_v26 }
  0x29   :  { %193 = vmatpush.msra.mxu2 %v70_v23  ;;  %119 = vmatpush.msra.mxu0 %v70_v23 }
  0x2a   :  { %208 = vmatpush.msra.mxu3 %v87_v30  ;;  %147 = vmatpush.msra.mxu1 %v87_v30 }
  0x2b   :  { %194 = vmatpush.msra.mxu2 %v69_v25  ;;  %120 = vmatpush.msra.mxu0 %v69_v25 }
  0x2c   :  { %209 = vmatpush.msra.mxu3 %v86_v31  ;;  %148 = vmatpush.msra.mxu1 %v86_v31 }
  0x2d   :  { %195 = vmatpush.msra.mxu2 %v68_v27  ;;  %121 = vmatpush.msra.mxu0 %v68_v27 }
  0x2e   :  { %125 = vmatmul.f32.vlgmr.msra.gmra.mxu2 %v101_v28  ;;  %122 = vmatmul.f32.vlgmr.msra.gmra.mxu0 %v100_v29 }
  0x2f   :  { %210 = vmatpush.msra.mxu3 %v85_v32  ;;  %149 = vmatpush.msra.mxu1 %v85_v32 }
  0x31   :  { %211 = vmatpush.msra.mxu3 %v84_v33  ;;  %150 = vmatpush.msra.mxu1 %v84_v33 }
  0xab   :  { %v123_v35 = vpop.f32.mrf.mxu0 }
  0xac   :  { %v124_v36 = vadd.f32 %v218_v34, %v123_v35 }
  0xae   :  { %v129_v37 = vmax.f32 %v124_v36, 0.0 }
  0xb0   :  { %151 = vmatmul.f32.vlgmr.msra.gmra.mxu1 %v129_v37 }
  0xb1   :  { %v126_v38 = vpop.f32.mrf.mxu2 }
  0xb2   :  { %v127_v39 = vadd.f32 %v218_v34, %v126_v38 }
  0xb4   :  { %v130_v40 = vmax.f32 %v127_v39, 0.0 }
  0xb6   :  { %154 = vmatmul.f32.vlgmr.msra.gmra.mxu3 %v130_v40 }
 0x12d   :  { %v152_v42 = vpop.f32.mrf.mxu1 }
 0x12e   :  { %v153_v43 = vadd.f32 %v219_v41, %v152_v42 }
 0x130   :  { %158 = vst [vmem:[#allocation8] sm:$0xff] %v153_v43 }
 0x139   :  { %v155_v44 = vpop.f32.mrf.mxu3 }
 0x13a   :  { %v156_v45 = vadd.f32 %v219_v41, %v155_v44 }
 0x13c   :  { %159 = vst [vmem:[#allocation8 + $0x8] sm:$0xff] %v156_v45 }
 0x13d   :  { %172 = dma.vmem_to_hbm [thread:$0]  %s165_s12, 256, %s167_s2, [#allocation4], %s323_s26, %s323_s26, %s324_s27  }
 0x13e   :  { %320 = dma.done.wait [#allocation4], 256  }
 0x13f   :  { %321 = vsyncadd [#allocation4], 4294967040 }
 0x140   :  { %177 = vsyncpa [#allocation3], 1 }
 0x141   :  { %178 = vsyncpa [#allocation6], 1 }
 0x142   :  { %179 = vsyncpa [#allocation4], 1 }

// kernel: tpu_custom_call.1
= control target key start
LH: loop header
LB: loop body
LE: loop exit
PB: predicated region body
PF: predicated region fallthrough
CT: control target
= control target key end

     0   :  { %10 = vsyncpa [#allocation3], 0  ;;  %s388_s0 = inlined_call_operand.hbm [shape: f32[16,128], index: 0, kind: input, shape index: {}]   ;;  %s389_s1 = inlined_call_operand.hbm [shape: f32[128,128], index: 1, kind: input, shape index: {}]   ;;  %s390_s2 = inlined_call_operand.vmem [shape: f32[1,128], index: 2, kind: input, shape index: {}]   ;;  %s391_s3 = inlined_call_operand.hbm [shape: f32[128,128], index: 3, kind: input, shape index: {}]   ;;  %s392_s4 = inlined_call_operand.vmem [shape: f32[1,128], index: 4, kind: input, shape index: {}]   ;;  %s393_s5 = inlined_call_operand.hbm [shape: f32[16,128], index: 5, kind: output, shape index: {}]  }
   0x1   :  { %11 = vsyncpa [#allocation6], 0 }
   0x2   :  { %12 = vsyncpa [#allocation4], 0  ;;  %s30_s20 = sshll.u32 %s389_s1, 4  ;;  %s322_s21 = smov [#allocation5]   ;;  %s31_s20 = int_to_ptr.hbm [resolvable:$true] %s30_s20 }
   0x3   :  { %s32_s22 = sshll.u32 %s322_s21, 4  ;;  %s17_s25 = sshll.u32 %s388_s0, 4  ;;  %s33_s22 = int_to_ptr.vmem [resolvable:$true] %s32_s22  ;;  %s18_s25 = int_to_ptr.hbm [resolvable:$true] %s17_s25 }
   0x4   :  { %s323_s26 = smov 128   ;;  %s324_s27 = smov 8  }
   0x5   :  { %38 = dma.hbm_to_vmem [thread:$0]  %s31_s20, 2048, %s33_s22, [#allocation6], %s323_s26, %s323_s26, %s324_s27  }
   0x6   :  { %s325_s28 = smov [#allocation2]   ;;  %s45_s1 = sshll.u32 %s391_s3, 4  ;;  %s46_s1 = int_to_ptr.hbm [resolvable:$true] %s45_s1 }
   0x7   :  { %s19_s29 = sshll.u32 %s325_s28, 4  ;;  %s326_s0 = smov [#allocation7]   ;;  %s20_s29 = int_to_ptr.vmem [resolvable:$true] %s19_s29 }
   0x8   :  { %25 = dma.hbm_to_vmem [thread:$0]  %s18_s25, 256, %s20_s29, [#allocation3], %s323_s26, %s323_s26, %s324_s27  }
   0x9   :  { %s47_s7 = sshll.u32 %s326_s0, 4  ;;  %s48_s7 = int_to_ptr.vmem [resolvable:$true] %s47_s7 }
   0xa   :  { %53 = dma.hbm_to_vmem [thread:$0]  %s46_s1, 2048, %s48_s7, [#allocation6], %s323_s26, %s323_s26, %s324_s27  }
   0xb   :  { %316 = dma.done.wait [#allocation3], 256  }
   0xc   :  { %317 = vsyncadd [#allocation3], 4294967040 }
   0xd   :  { %318 = dma.done.wait [#allocation6], 4096  }
   0xe   :  { %319 = vsyncadd [#allocation6], 4294963200  ;;  %v83_v0 = vld [vmem:[#allocation5 + $0x78] sm:$0xff]  ;;  %v82_v1 = vld [vmem:[#allocation5 + $0x70] sm:$0xff]  ;;  %s327_s11 = smov [#allocation8]  }
   0xf   :  { %180 = vmatpush.msra.mxu2 %v83_v0  ;;  %106 = vmatpush.msra.mxu0 %v83_v0  ;;  %v81_v2 = vld [vmem:[#allocation5 + $0x68] sm:$0xff]  ;;  %v80_v3 = vld [vmem:[#allocation5 + $0x60] sm:$0xff]  ;;  %v79_v4 = vld [vmem:[#allocation5 + $0x58] sm:$0xff]  ;;  %s164_s12 = sshll.u32 %s327_s11, 4  ;;  %s165_s12 = int_to_ptr.vmem [resolvable:$true] %s164_s12 }
  0x10   :  { %v99_v5 = vld [vmem:[#allocation7 + $0x78] sm:$0xff]  ;;  %v98_v6 = vld [vmem:[#allocation7 + $0x70] sm:$0xff]  ;;  %v97_v8 = vld [vmem:[#allocation7 + $0x68] sm:$0xff] }
  0x11   :  { %181 = vmatpush.msra.mxu2 %v82_v1  ;;  %107 = vmatpush.msra.mxu0 %v82_v1  ;;  %v78_v7 = vld [vmem:[#allocation5 + $0x50] sm:$0xff]  ;;  %v77_v9 = vld [vmem:[#allocation5 + $0x48] sm:$0xff]  ;;  %v96_v10 = vld [vmem:[#allocation7 + $0x60] sm:$0xff] }
  0x12   :  { %196 = vmatpush.msra.mxu3 %v99_v5  ;;  %135 = vmatpush.msra.mxu1 %v99_v5  ;;  %v76_v11 = vld [vmem:[#allocation5 + $0x40] sm:$0xff]  ;;  %v95_v12 = vld [vmem:[#allocation7 + $0x58] sm:$0xff]  ;;  %v94_v14 = vld [vmem:[#allocation7 + $0x50] sm:$0xff] }
  0x13   :  { %182 = vmatpush.msra.mxu2 %v81_v2  ;;  %108 = vmatpush.msra.mxu0 %v81_v2  ;;  %v75_v13 = vld [vmem:[#allocation5 + $0x38] sm:$0xff]  ;;  %v74_v15 = vld [vmem:[#allocation5 + $0x30] sm:$0xff]  ;;  %v93_v16 = vld [vmem:[#allocation7 + $0x48] sm:$0xff] }
  0x14   :  { %197 = vmatpush.msra.mxu3 %v98_v6  ;;  %136 = vmatpush.msra.mxu1 %v98_v6  ;;  %v73_v17 = vld [vmem:[#allocation5 + $0x28] sm:$0xff]  ;;  %v92_v18 = vld [vmem:[#allocation7 + $0x40] sm:$0xff]  ;;  %v91_v20 = vld [vmem:[#allocation7 + $0x38] sm:$0xff] }
  0x15   :  { %183 = vmatpush.msra.mxu2 %v80_v3  ;;  %109 = vmatpush.msra.mxu0 %v80_v3  ;;  %v72_v19 = vld [vmem:[#allocation5 + $0x20] sm:$0xff]  ;;  %v71_v21 = vld [vmem:[#allocation5 + $0x18] sm:$0xff]  ;;  %v90_v22 = vld [vmem:[#allocation7 + $0x30] sm:$0xff] }
  0x16   :  { %198 = vmatpush.msra.mxu3 %v97_v8  ;;  %137 = vmatpush.msra.mxu1 %v97_v8  ;;  %v70_v23 = vld [vmem:[#allocation5 + $0x10] sm:$0xff]  ;;  %v89_v24 = vld [vmem:[#allocation7 + $0x28] sm:$0xff]  ;;  %v88_v26 = vld [vmem:[#allocation7 + $0x20] sm:$0xff] }
  0x17   :  { %184 = vmatpush.msra.mxu2 %v79_v4  ;;  %110 = vmatpush.msra.mxu0 %v79_v4  ;;  %v69_v25 = vld [vmem:[#allocation5 + $0x8] sm:$0xff]  ;;  %v68_v27 = vld [vmem:[#allocation5] sm:$0xff]  ;;  %v101_v28 = vld [vmem:[#allocation2 + $0x8] sm:$0xff] }
  0x18   :  { %199 = vmatpush.msra.mxu3 %v96_v10  ;;  %138 = vmatpush.msra.mxu1 %v96_v10  ;;  %v100_v29 = vld [vmem:[#allocation2] sm:$0xff]  ;;  %v87_v30 = vld [vmem:[#allocation7 + $0x18] sm:$0xff]  ;;  %v85_v32 = vld [vmem:[#allocation7 + $0x8] sm:$0xff] }
  0x19   :  { %185 = vmatpush.msra.mxu2 %v78_v7  ;;  %111 = vmatpush.msra.mxu0 %v78_v7  ;;  %v86_v31 = vld [vmem:[#allocation7 + $0x10] sm:$0xff]  ;;  %v84_v33 = vld [vmem:[#allocation7] sm:$0xff] }
  0x1a   :  { %200 = vmatpush.msra.mxu3 %v95_v12  ;;  %139 = vmatpush.msra.mxu1 %v95_v12  ;;  %v218_v34 = vld [vmem:[%s390_s2] ss:$0 sm:$0xff]  ;;  %s166_s2 = sshll.u32 %s393_s5, 4  ;;  %s167_s2 = int_to_ptr.hbm [resolvable:$true] %s166_s2 }
  0x1b   :  { %186 = vmatpush.msra.mxu2 %v77_v9  ;;  %112 = vmatpush.msra.mxu0 %v77_v9  ;;  %v219_v41 = vld [vmem:[%s392_s4] ss:$0 sm:$0xff] }
  0x1c   :  { %201 = vmatpush.msra.mxu3 %v94_v14  ;;  %140 = vmatpush.msra.mxu1 %v94_v14 }
  0x1d   :  { %187 = vmatpush.msra.mxu2 %v76_v11  ;;  %113 = vmatpush.msra.mxu0 %v76_v11 }
  0x1e   :  { %202 = vmatpush.msra.mxu3 %v93_v16  ;;  %141 = vmatpush.msra.mxu1 %v93_v16 }
  0x1f   :  { %188 = vmatpush.msra.mxu2 %v75_v13  ;;  %114 = vmatpush.msra.mxu0 %v75_v13 }
  0x20   :  { %203 = vmatpush.msra.mxu3 %v92_v18  ;;  %142 = vmatpush.msra.mxu1 %v92_v18 }
  0x21   :  { %189 = vmatpush.msra.mxu2 %v74_v15  ;;  %115 = vmatpush.msra.mxu0 %v74_v15 }
  0x22   :  { %204 = vmatpush.msra.mxu3 %v91_v20  ;;  %143 = vmatpush.msra.mxu1 %v91_v20 }
  0x23   :  { %190 = vmatpush.msra.mxu2 %v73_v17  ;;  %116 = vmatpush.msra.mxu0 %v73_v17 }
  0x24   :  { %205 = vmatpush.msra.mxu3 %v90_v22  ;;  %144 = vmatpush.msra.mxu1 %v90_v22 }
  0x25   :  { %191 = vmatpush.msra.mxu2 %v72_v19  ;;  %117 = vmatpush.msra.mxu0 %v72_v19 }
  0x26   :  { %206 = vmatpush.msra.mxu3 %v89_v24  ;;  %145 = vmatpush.msra.mxu1 %v89_v24 }
  0x27   :  { %192 = vmatpush.msra.mxu2 %v71_v21  ;;  %118 = vmatpush.msra.mxu0 %v71_v21 }
  0x28   :  { %207 = vmatpush.msra.mxu3 %v88_v26  ;;  %146 = vmatpush.msra.mxu1 %v88_v26 }
  0x29   :  { %193 = vmatpush.msra.mxu2 %v70_v23  ;;  %119 = vmatpush.msra.mxu0 %v70_v23 }
  0x2a   :  { %208 = vmatpush.msra.mxu3 %v87_v30  ;;  %147 = vmatpush.msra.mxu1 %v87_v30 }
  0x2b   :  { %194 = vmatpush.msra.mxu2 %v69_v25  ;;  %120 = vmatpush.msra.mxu0 %v69_v25 }
  0x2c   :  { %209 = vmatpush.msra.mxu3 %v86_v31  ;;  %148 = vmatpush.msra.mxu1 %v86_v31 }
  0x2d   :  { %195 = vmatpush.msra.mxu2 %v68_v27  ;;  %121 = vmatpush.msra.mxu0 %v68_v27 }
  0x2e   :  { %125 = vmatmul.f32.vlgmr.msra.gmra.mxu2 %v101_v28  ;;  %122 = vmatmul.f32.vlgmr.msra.gmra.mxu0 %v100_v29 }
  0x2f   :  { %210 = vmatpush.msra.mxu3 %v85_v32  ;;  %149 = vmatpush.msra.mxu1 %v85_v32 }
  0x31   :  { %211 = vmatpush.msra.mxu3 %v84_v33  ;;  %150 = vmatpush.msra.mxu1 %v84_v33 }
  0xab   :  { %v123_v35 = vpop.f32.mrf.mxu0 }
  0xac   :  { %v124_v36 = vadd.f32 %v218_v34, %v123_v35 }
  0xae   :  { %v129_v37 = vmax.f32 %v124_v36, 0.0 }
  0xb0   :  { %151 = vmatmul.f32.vlgmr.msra.gmra.mxu1 %v129_v37 }
  0xb1   :  { %v126_v38 = vpop.f32.mrf.mxu2 }
  0xb2   :  { %v127_v39 = vadd.f32 %v218_v34, %v126_v38 }
  0xb4   :  { %v130_v40 = vmax.f32 %v127_v39, 0.0 }
  0xb6   :  { %154 = vmatmul.f32.vlgmr.msra.gmra.mxu3 %v130_v40 }
 0x12d   :  { %v152_v42 = vpop.f32.mrf.mxu1 }
 0x12e   :  { %v153_v43 = vadd.f32 %v219_v41, %v152_v42 }
 0x130   :  { %158 = vst [vmem:[#allocation8] sm:$0xff] %v153_v43 }
 0x139   :  { %v155_v44 = vpop.f32.mrf.mxu3 }
 0x13a   :  { %v156_v45 = vadd.f32 %v219_v41, %v155_v44 }
 0x13c   :  { %159 = vst [vmem:[#allocation8 + $0x8] sm:$0xff] %v156_v45 }
 0x13d   :  { %172 = dma.vmem_to_hbm [thread:$0]  %s165_s12, 256, %s167_s2, [#allocation4], %s323_s26, %s323_s26, %s324_s27  }
 0x13e   :  { %320 = dma.done.wait [#allocation4], 256  }
 0x13f   :  { %321 = vsyncadd [#allocation4], 4294967040 }
 0x140   :  { %177 = vsyncpa [#allocation3], 1 }
 0x141   :  { %178 = vsyncpa [#allocation6], 1 }
 0x142   :  { %179 = vsyncpa [#allocation4], 1 }

</bundles_post_ra>
